<compile_context>
chip_gen: v7x
topology: tpu7x:2x2x1
jax: 0.10.0
libtpu: 0.0.40
codegen_flags: <defaults>
</compile_context>

<pallas_src>
import jax
import jax.numpy as jnp
from jax.experimental import pallas as pl
from jax.experimental.pallas import tpu as pltpu


def _sgu_kernel(w_ref, b_ref, u_ref, v_ref, o_ref):
    """out = u * (W' @ v + bias') on one (N, T) lane tile.

    w_ref: VMEM (N, N) f32  LayerNorm-folded spatial weight  (grid-resident)
    b_ref: VMEM (N, 1) f32  LayerNorm-folded spatial bias    (grid-resident)
    u_ref: VMEM (N, T)      gate half
    v_ref: VMEM (N, T)      value half
    o_ref: VMEM (N, T)      output tile
    """
    v = v_ref[...].astype(jnp.float32)
    proj = jnp.dot(w_ref[...], v, preferred_element_type=jnp.float32)   # MXU
    proj = proj + b_ref[...]                                            # bias[n] bcast over lanes
    o_ref[...] = (u_ref[...].astype(jnp.float32) * proj).astype(o_ref.dtype)


_TILE_CANDIDATES = (2048, 1024, 512, 256, 128)


def _pick_tile(total, n_rows, other_steps):
    """Largest multiple-of-128 tile dividing `total` under a ~2 MiB/stream VMEM
    budget, preferring a total grid length >= 2 (v7x has 2 TensorCores)."""
    budget = 2 * 1024 * 1024
    max_tile = max(128, min(2048, (budget // max(4 * n_rows, 1)) // 128 * 128))
    cands = [t for t in _TILE_CANDIDATES if t <= max_tile and total % t == 0]
    for t in cands:
        if other_steps * (total // t) >= 2:
            return t
    return cands[-1]


def _vmem_limit_bytes(n_rows, tile, itemsize):
    streams = 2 * 3 * n_rows * tile * itemsize                 # u, v, out double-buffered
    resident = 2 * (n_rows * n_rows * 4 + n_rows * 128 * 4)    # W', bias'
    total = streams + resident + (4 << 20)                     # headroom
    return int(min(max(total, 16 << 20), 60 << 20))


def spatial_gating_unit(x, w, bias):
    """x: (B, N, 2*D); w: (N, N); bias: (N,).  Returns (B, N, D)."""
    B, N, C = x.shape
    D = C // 2
    assert C == 2 * D and w.shape == (N, N) and bias.shape == (N,)
    itemsize = jnp.dtype(x.dtype).itemsize

    # ---- Hoisted global LayerNorm statistics (two-pass, fused by XLA) ----------
    v_slice = x[..., D:]
    mean = jnp.mean(v_slice, dtype=jnp.float32)
    var = jnp.mean(jnp.square(v_slice.astype(jnp.float32) - mean), dtype=jnp.float32)
    inv_std = jax.lax.rsqrt(var + jnp.float32(1e-6))

    # ---- Fold the LayerNorm (global stats, identity affine) into W / bias ------
    #   W' = inv_std * W ;  bias'[n] = bias[n] - inv_std * mean * sum_m W[n, m]
    w_f32 = w.astype(jnp.float32)
    w_eff = w_f32 * inv_std
    b_eff = (bias.astype(jnp.float32)
             - inv_std * mean * jnp.sum(w_f32, axis=1)).reshape(N, 1)
    # TODO(synk): for N >~ 2048 on v7x (64 MiB VMEM) stream W' in (tk, N) tiles
    # with an f32 VMEM accumulator (or hold it as bf16) instead of keeping the
    # full f32 (N, N) block resident; likewise cast W'/v to bf16 when MXU-bound.

    if D % 128 == 0:
        # ---- Direct path: x read in place, output written in place (no transposes).
        td = _pick_tile(D, N, other_steps=B)
        half_blocks = D // td       # block offset of the v half along channels
        grid = (B, D // td)

        return pl.pallas_call(
            _sgu_kernel,
            out_shape=jax.ShapeDtypeStruct((B, N, D), x.dtype),
            grid=grid,
            in_specs=[
                pl.BlockSpec((N, N), lambda b, j: (0, 0)),             # W'    (resident)
                pl.BlockSpec((N, 1), lambda b, j: (0, 0)),             # bias' (resident)
                pl.BlockSpec((pl.Squeezed(), N, td),
                             lambda b, j: (b, 0, j)),                  # u half of x
                pl.BlockSpec((pl.Squeezed(), N, td),
                             lambda b, j: (b, 0, j + half_blocks)),    # v half of x
            ],
            out_specs=pl.BlockSpec((pl.Squeezed(), N, td),
                                   lambda b, j: (b, 0, j)),
            compiler_params=pltpu.CompilerParams(
                dimension_semantics=("parallel", "parallel"),          # megacore
                vmem_limit_bytes=_vmem_limit_bytes(N, td, itemsize),
            ),
        )(w_eff, b_eff, x, x)

    # ---- Folded path (small / unaligned D): (B, N, D) -> (N, B*D) for lane density.
    F = B * D
    u2 = jnp.transpose(x[..., :D], (1, 0, 2)).reshape(N, F)
    v2 = jnp.transpose(x[..., D:], (1, 0, 2)).reshape(N, F)
    f128 = ((F + 127) // 128) * 128             # pad only to the next vreg width
    if f128 != F:
        pad = ((0, 0), (0, f128 - F))
        u2 = jnp.pad(u2, pad)                   # zero gate => pad lanes of out are 0
        v2 = jnp.pad(v2, pad)
    tf = _pick_tile(f128, N, other_steps=1)
    grid = (f128 // tf,)

    out2 = pl.pallas_call(
        _sgu_kernel,
        out_shape=jax.ShapeDtypeStruct((N, f128), x.dtype),
        grid=grid,
        in_specs=[
            pl.BlockSpec((N, N), lambda i: (0, 0)),                    # W'    (resident)
            pl.BlockSpec((N, 1), lambda i: (0, 0)),                    # bias' (resident)
            pl.BlockSpec((N, tf), lambda i: (0, i)),                   # u tile
            pl.BlockSpec((N, tf), lambda i: (0, i)),                   # v tile
        ],
        out_specs=pl.BlockSpec((N, tf), lambda i: (0, i)),
        compiler_params=pltpu.CompilerParams(
            dimension_semantics=("parallel",),
            vmem_limit_bytes=_vmem_limit_bytes(N, tf, itemsize),
        ),
    )(w_eff, b_eff, u2, v2)

    return jnp.transpose(out2[:, :F].reshape(N, B, D), (1, 0, 2))


def _reference(x, w, b):
    """Pure-JAX reference matching the PyTorch forward."""
    D = x.shape[-1] // 2
    u, v = x[..., :D], x[..., D:]
    mean = jnp.mean(v)
    var = jnp.mean((v - mean) ** 2)
    v_n = (v - mean) / jnp.sqrt(var + 1e-6)
    proj = jnp.einsum("nm,bmd->bnd", w, v_n,
                      precision=jax.lax.Precision.HIGHEST) + b[None, :, None]
    return u * proj


if __name__ == "__main__":
    key = jax.random.PRNGKey(0)

    # First shape exercises the small-D folded path; second exercises the
    # direct (no-transpose) path with D a multiple of 128.
    for (B, N, D) in ((2, 16, 16), (2, 16, 128)):
        key, k_x, k_w, k_b = jax.random.split(key, 4)
        x = jax.random.normal(k_x, (B, N, 2 * D), dtype=jnp.float32)

        # Deterministic init for the spatial-projection Linear(N -> N) params
        # (the PyTorch module re-inits them randomly inside forward; we seed).
        bound = 1.0 / (N ** 0.5)
        w = jax.random.uniform(k_w, (N, N), minval=-bound, maxval=bound,
                               dtype=jnp.float32)
        b = jax.random.uniform(k_b, (N,), minval=-bound, maxval=bound,
                               dtype=jnp.float32)

        out = jax.block_until_ready(spatial_gating_unit(x, w, b))
        ref = _reference(x, w, b)

        assert out.shape == (B, N, D)
        assert jnp.allclose(out, ref, atol=1e-4, rtol=1e-4), \
            f"mismatch vs reference at (B,N,D)=({B},{N},{D})"

    print("KERNEL_OK")
</pallas_src>

<mosaic_0001>
module attributes {stable_mosaic.version = 11 : i64} {
  func.func @_sgu_kernel(%arg0: i32, %arg1: memref<16x16xf32, #tpu.memory_space<vmem>>, %arg2: memref<16x1xf32, #tpu.memory_space<vmem>>, %arg3: memref<16x128xf32, #tpu.memory_space<vmem>>, %arg4: memref<16x128xf32, #tpu.memory_space<vmem>>, %arg5: memref<16x128xf32, #tpu.memory_space<vmem>>) attributes {dimension_semantics = [#tpu.dimension_semantics<parallel>], iteration_bounds = array<i64: 1>, scalar_prefetch = 0 : i64, scratch_operands = 0 : i64, tpu.core_type = #tpu.core_type<tc>, window_params = [{pipeline_mode = #tpu.pipeline_mode<synchronous>, transform_indices = @transform_0, window_bounds = array<i64: 16, 16>}, {pipeline_mode = #tpu.pipeline_mode<synchronous>, transform_indices = @transform_1, window_bounds = array<i64: 16, 1>}, {transform_indices = @transform_2, window_bounds = array<i64: 16, 128>}, {transform_indices = @transform_3, window_bounds = array<i64: 16, 128>}, {transform_indices = @transform_4, window_bounds = array<i64: 16, 128>}]} {
    %c0 = arith.constant 0 : index
    %c0_0 = arith.constant 0 : index
    %0 = vector.load %arg4[%c0, %c0_0] : memref<16x128xf32, #tpu.memory_space<vmem>>, vector<16x128xf32>
    %c0_1 = arith.constant 0 : index
    %c0_2 = arith.constant 0 : index
    %1 = vector.load %arg1[%c0_1, %c0_2] : memref<16x16xf32, #tpu.memory_space<vmem>>, vector<16x16xf32>
    %cst = arith.constant dense<0.000000e+00> : vector<16x128xf32>
    %2 = tpu.matmul %1, %0, %cst {dimension_numbers = #tpu.dot_dimension_numbers<[1], [0], [0], [1], [0, 0, 1, 1], [], []>} : vector<16x16xf32>, vector<16x128xf32>, vector<16x128xf32> -> vector<16x128xf32>
    %c0_3 = arith.constant 0 : index
    %c0_4 = arith.constant 0 : index
    %3 = vector.load %arg2[%c0_3, %c0_4] : memref<16x1xf32, #tpu.memory_space<vmem>>, vector<16x1xf32>
    %4 = vector.broadcast %3 : vector<16x1xf32> to vector<16x128xf32>
    %5 = arith.addf %2, %4 : vector<16x128xf32>
    %c0_5 = arith.constant 0 : index
    %c0_6 = arith.constant 0 : index
    %6 = vector.load %arg3[%c0_5, %c0_6] : memref<16x128xf32, #tpu.memory_space<vmem>>, vector<16x128xf32>
    %7 = arith.mulf %6, %5 : vector<16x128xf32>
    %c0_7 = arith.constant 0 : index
    %c0_8 = arith.constant 0 : index
    %8 = vector.load %arg5[%c0_7, %c0_8] : memref<16x128xf32, #tpu.memory_space<vmem>>, vector<16x128xf32>
    tpu.vector_store %arg5[%c0_7, %c0_8], %7 {strides = array<i32>} : memref<16x128xf32, #tpu.memory_space<vmem>>, vector<16x128xf32>,
    return
  }
  func.func @transform_0(%arg0: i32) -> (i32, i32) {
    %c0_i32 = arith.constant 0 : i32
    %c0_i32_0 = arith.constant 0 : i32
    %c0_i32_1 = arith.constant 0 : i32
    return %c0_i32, %c0_i32_0 : i32, i32
  }
  func.func @transform_1(%arg0: i32) -> (i32, i32) {
    %c0_i32 = arith.constant 0 : i32
    %c0_i32_0 = arith.constant 0 : i32
    %c0_i32_1 = arith.constant 0 : i32
    return %c0_i32, %c0_i32_0 : i32, i32
  }
  func.func @transform_2(%arg0: i32) -> (i32, i32) {
    %c0_i32 = arith.constant 0 : i32
    %c0_i32_0 = arith.constant 0 : i32
    return %c0_i32, %arg0 : i32, i32
  }
  func.func @transform_3(%arg0: i32) -> (i32, i32) {
    %c0_i32 = arith.constant 0 : i32
    %c0_i32_0 = arith.constant 0 : i32
    return %c0_i32, %arg0 : i32, i32
  }
  func.func @transform_4(%arg0: i32) -> (i32, i32) {
    %c0_i32 = arith.constant 0 : i32
    %c0_i32_0 = arith.constant 0 : i32
    return %c0_i32, %arg0 : i32, i32
  }
}

</mosaic_0001>

<bundles_post_ra>
// kernel: tpu_custom_call.1
= control target key start
LH: loop header
LB: loop body
LE: loop exit
PB: predicated region body
PF: predicated region fallthrough
CT: control target
= control target key end

     0   :  { %9 = vsyncpa [#allocation3], 0  ;;  %s352_s0 = inlined_call_operand.vmem [shape: f32[16,16], index: 0, kind: input, shape index: {}]   ;;  %s353_s1 = inlined_call_operand.vmem [shape: f32[16,1], index: 1, kind: input, shape index: {}]   ;;  %s354_s2 = inlined_call_operand.hbm [shape: f32[16,128], index: 2, kind: input, shape index: {}]   ;;  %s355_s3 = inlined_call_operand.hbm [shape: f32[16,128], index: 3, kind: input, shape index: {}]   ;;  %s356_s4 = inlined_call_operand.hbm [shape: f32[16,128], index: 4, kind: output, shape index: {}]  }
   0x1   :  { %10 = vsyncpa [#allocation6], 0 }
   0x2   :  { %11 = vsyncpa [#allocation4], 0  ;;  %s264_s15 = smov [#allocation2]   ;;  %s192_s19 = scalar_lea.hbm %s354_s2, 256 }
   0x3   :  { %s21_s16 = sshll.u32 %s264_s15, 4  ;;  %p193_p0 = scmp.ne.s32.totalorder %s354_s2, %s192_s19  ;;  %s22_s16 = int_to_ptr.vmem [resolvable:$true] %s21_s16 }
   0x4   :  { %p196_p1 = scmp.lt.u32.totalorder %s192_s19, %s354_s2 }
   0x6   :  { %p198_p2 = pnand %p196_p1, %p193_p0 }
   0x8   :  { %201 = shalt.err (!%p198_p2)
}
   0x9   :  { %s202_s24 = scalar_lea.vmem %s22_s16, 256  ;;  %p207_p4 = scmp.lt.s32.totalorder %s22_s16, %s22_s16 }
   0xa   :  { %p203_p3 = scmp.ne.s32.totalorder %s22_s16, %s202_s24  ;;  %p208_p5 = scmp.lt.s32.totalorder %s202_s24, %s202_s24 }
   0xc   :  { %p209_p6 = por %p208_p5, %p207_p4 }
   0xe   :  { %p210_p7 = pnand %p209_p6, %p203_p3 }
  0x10   :  { %213 = shalt.err (!%p210_p7)
}
  0x11   :  { %s265_s25 = smov 128   ;;  %s266_s26 = smov 8  }
  0x12   :  { %27 = dma.hbm_to_vmem [thread:$0]  %s354_s2, 256, %s22_s16, [#allocation3], %s265_s25, %s265_s25, %s266_s26  }
  0x13   :  { %s267_s29 = smov [#allocation5]   ;;  %s214_s7 = scalar_lea.hbm %s355_s3, 256 }
  0x14   :  { %s33_s30 = sshll.u32 %s267_s29, 4  ;;  %p215_p8 = scmp.ne.s32.totalorder %s355_s3, %s214_s7  ;;  %s34_s30 = int_to_ptr.vmem [resolvable:$true] %s33_s30 }
  0x15   :  { %p218_p9 = scmp.lt.u32.totalorder %s214_s7, %s355_s3 }
  0x17   :  { %p220_p10 = pnand %p218_p9, %p215_p8 }
  0x19   :  { %223 = shalt.err (!%p220_p10)
}
  0x1a   :  { %s224_s12 = scalar_lea.vmem %s34_s30, 256  ;;  %p229_p12 = scmp.lt.s32.totalorder %s34_s30, %s34_s30 }
  0x1b   :  { %p225_p11 = scmp.ne.s32.totalorder %s34_s30, %s224_s12  ;;  %p230_p13 = scmp.lt.s32.totalorder %s224_s12, %s224_s12 }
  0x1d   :  { %p231_p0 = por %p230_p13, %p229_p12 }
  0x1f   :  { %p232_p1 = pnand %p231_p0, %p225_p11 }
  0x21   :  { %235 = shalt.err (!%p232_p1)
}
  0x22   :  { %39 = dma.hbm_to_vmem [thread:$0]  %s355_s3, 256, %s34_s30, [#allocation6], %s265_s25, %s265_s25, %s266_s26  }
  0x23   :  { %258 = dma.done.wait [#allocation3], 256  }
  0x24   :  { %259 = vsyncadd [#allocation3], 4294967040 }
  0x25   :  { %260 = dma.done.wait [#allocation6], 256  }
  0x26   :  { %261 = vsyncadd [#allocation6], 4294967040  ;;  %v268_v0 = vmov 0   ;;  %vm62_vm0 = vcmask 130048   ;;  %v46_v1 = vld [vmem:[#allocation5] sm:$0xff]  ;;  %v47_v2 = vld [vmem:[#allocation5 + $0x8] sm:$0xff] }
  0x27   :  { %191 = vset.pattern.permute.xlu0 %v268_v0  ;;  %v48_v3 = vld [vmem:[%s352_s0] sm:$0xff]  ;;  %v181_v4 = vpack.c.bf16 %v47_v2, %v46_v1  ;;  %v51_v6 = vld [vmem:[%s353_s1 + $0x8] sm:$0xff]  ;;  %s269_s21 = smov [#allocation7]  }
  0x28   :  { %178 = vmatprep.mubr.msk.f32.mxu0 %vm62_vm0, %v48_v3  ;;  %v50_v5 = vld [vmem:[%s353_s1] sm:$0xff]  ;;  %v49_v7 = vld [vmem:[%s352_s0 + $0x8] sm:$0xff]  ;;  %s155_s22 = sshll.u32 %s269_s21, 4  ;;  %s156_s22 = int_to_ptr.vmem [resolvable:$true] %s155_s22 }
  0x29   :  { %54 = vperm.xlu0 %191, %v50_v5   ;;  %182 = vmatprep.subr.bf16.mxu0 %v181_v4  ;;  %v145_v11 = vld [vmem:[#allocation2 + $0x8] sm:$0xff]  ;;  %v144_v14 = vld [vmem:[#allocation2] sm:$0xff]  ;;  %s236_s1 = scalar_lea.vmem %s156_s22, 256  ;;  %p241_p3 = scmp.lt.s32.totalorder %s156_s22, %s156_s22 }
  0x2a   :  { %184 = vmatpush3.bf16.msra.mxu0 %v181_v4  ;;  %p237_p2 = scmp.ne.s32.totalorder %s156_s22, %s236_s1  ;;  %p242_p4 = scmp.lt.s32.totalorder %s236_s1, %s236_s1 }
  0x2c   :  { %p243_p5 = por %p242_p4, %p241_p3 }
  0x2d   :  { %59 = vperm.xlu0 %191, %v51_v6   ;;  %179 = vmatmul.mubr.msk.f32.vlgmr.msra.gmra.mrb[0].mxu0 %vm62_vm0, %v49_v7 }
  0x2e   :  { %p244_p6 = pnand %p243_p5, %p237_p2 }
  0xa8   :  { %v55_v8 = vpop.permute.xlu0 %54 }
  0xac   :  { %v60_v9 = vpop.permute.xlu0 %59 }
 0x100   :  { %v180_v10 = vpop.f32.mrb[0].mxu0 }
 0x101   :  { %v141_v12 = vadd.f32 %v180_v10, %v60_v9  ;;  %v135_v13 = vpop.f32.mrb[1].mxu0 }
 0x102   :  { %v136_v15 = vadd.f32 %v135_v13, %v55_v8 }
 0x103   :  { %v147_v16 = vmul.f32 %v145_v11, %v141_v12 }
 0x104   :  { %v146_v17 = vmul.f32 %v144_v14, %v136_v15 }
 0x105   :  { %149 = vst [vmem:[#allocation7 + $0x8] sm:$0xff] %v147_v16 }
 0x106   :  { %148 = vst [vmem:[#allocation7] sm:$0xff] %v146_v17 }
 0x107   :  { %247 = shalt.err (!%p244_p6)
}
 0x108   :  { %s248_s24 = scalar_lea.hbm %s356_s4, 256 }
 0x109   :  { %p249_p7 = scmp.ne.s32.totalorder %s356_s4, %s248_s24  ;;  %p252_p8 = scmp.lt.u32.totalorder %s248_s24, %s356_s4 }
 0x10b   :  { %p254_p9 = pnand %p252_p8, %p249_p7 }
 0x10d   :  { %257 = shalt.err (!%p254_p9)
}
 0x10e   :  { %161 = dma.vmem_to_hbm [thread:$0]  %s156_s22, 256, %s356_s4, [#allocation4], %s265_s25, %s265_s25, %s266_s26  }
 0x10f   :  { %262 = dma.done.wait [#allocation4], 256  }
 0x110   :  { %263 = vsyncadd [#allocation4], 4294967040 }
 0x111   :  { %165 = vsyncpa [#allocation3], 1 }
 0x112   :  { %166 = vsyncpa [#allocation6], 1 }
 0x113   :  { %167 = vsyncpa [#allocation4], 1 }

</bundles_post_ra>
